<compile_context>
chip_gen: v6e
topology: v6e:2x2x1
jax: 0.10.0
libtpu: 0.0.40
codegen_flags: <defaults>
</compile_context>

<pallas_src>
import math

import jax
import jax.numpy as jnp
import numpy as np
from jax.experimental import pallas as pl
from jax.experimental.pallas import tpu as pltpu

_MIB = 1024 * 1024


# ---------------------------------------------------------------------------
# Kernel
# ---------------------------------------------------------------------------
def _fusion_attention_kernel(
    x1_ref, x2_ref,                 # (1, C, tile_n) activations, native dtype
    wf1_ref, wf2_ref, bf_ref,       # fusion conv (concat split) + folded-BN bias
    watt_ref, batt_ref,             # stacked attention convs (2C, C) + bias (2C, 1)
    o1_ref, o2_ref,                 # (1, C, tile_n)
):
    C = x1_ref.shape[1]
    x1 = x1_ref[0]                  # (C, tile_n), native dtype (f32 or bf16)
    x2 = x2_ref[0]
    bf = bf_ref[...]                # (C, 1)  f32
    b_att = batt_ref[...]           # (2C, 1) f32

    if C >= 8:
        # MXU path: Fusion = Conv1x1(concat(x1,x2)) folded into two matmuls,
        # then both attention convs as one stacked matmul.
        f = jnp.dot(wf1_ref[...], x1, preferred_element_type=jnp.float32)
        f = f + jnp.dot(wf2_ref[...], x2, preferred_element_type=jnp.float32)
        f = jnp.maximum(f + bf, 0.0)                                   # (C, tile_n) f32
        z = jnp.dot(watt_ref[...], f, preferred_element_type=jnp.float32) + b_att
    else:
        # Tiny-C path: unrolled VPU broadcast-MAC over channels (avoids MXU
        # push/pop latency on K=M<8 matmuls). Weight math kept in f32.
        wf1 = wf1_ref[...].astype(jnp.float32)
        wf2 = wf2_ref[...].astype(jnp.float32)
        watt = watt_ref[...].astype(jnp.float32)
        acc = bf
        for c in range(C):
            acc = acc + wf1[:, c:c + 1] * x1[c:c + 1, :] \
                      + wf2[:, c:c + 1] * x2[c:c + 1, :]
        f = jnp.maximum(acc, 0.0)                                      # (C, tile_n) f32
        z = b_att
        for c in range(C):
            z = z + watt[:, c:c + 1] * f[c:c + 1, :]                   # (2C, tile_n)

    att = jax.nn.sigmoid(z)          # (2C, tile_n) f32 (EUP)
    a1 = att[:C, :]
    a2 = att[C:, :]

    # Gated outputs + final ReLU (f32 math, cast only at the lane-dense store).
    o1_ref[0] = jnp.maximum(x1 * a1, 0.0).astype(o1_ref.dtype)
    o2_ref[0] = jnp.maximum(x2 * a2, 0.0).astype(o2_ref.dtype)


# ---------------------------------------------------------------------------
# Tile / VMEM sizing (generation-aware)
# ---------------------------------------------------------------------------
def _round_up(x, m):
    return ((x + m - 1) // m) * m


def _vmem_budget_bytes():
    try:
        cap = int(pltpu.get_tpu_info().vmem_capacity_bytes)
    except Exception:
        cap = 64 * _MIB
    if cap <= 64 * _MIB:            # v7x-class parts: 64 MiB physical VMEM
        budget = 40 * _MIB
    else:                           # v5e / v6e: 128 MiB physical VMEM
        budget = 64 * _MIB
    return budget, cap


def _pick_tile_n(C, HW, N, io_bytes):
    HW128 = _round_up(HW, 128)
    m = HW128 // 128
    budget, cap = _vmem_budget_bytes()

    # Per-lane VMEM footprint of one grid step:
    #   2 in + 2 out tiles, double-buffered  -> 8 * io_bytes * C
    #   f32 intermediates (f, att=2C, upcasts/headroom) -> ~6 * 4 * C
    per_lane = C * (8 * io_bytes + 24)
    cap_lanes = max(128, (budget // per_lane) // 128 * 128)
    cap_lanes = min(cap_lanes, 16384)

    # Megacore coverage (v7x: 2 TCs share the grid): aim for >= ~8 grid steps,
    # but never shrink the tile below 512 lanes to get them.
    tiles_needed = max(1, math.ceil(8 / max(1, N)))
    cap_lanes = min(cap_lanes, max(512, HW128 // tiles_needed))

    # Largest multiple-of-128 divisor of HW128 that fits the cap, so no
    # wrapper-side pad-to-tile / output slice is needed beyond 128 alignment.
    tile_n = 128
    for d in range(min(m, cap_lanes // 128), 0, -1):
        if m % d == 0:
            tile_n = 128 * d
            break

    vmem_limit = min(cap - 8 * _MIB, budget + 16 * _MIB)
    return tile_n, HW128, vmem_limit


# ---------------------------------------------------------------------------
# Wrapper
# ---------------------------------------------------------------------------
def fusion_attention_pallas(x1_nchw, x2_nchw, params):
    """x1_nchw, x2_nchw: (N, C, H, W). Returns (o1, o2) in NCHW."""
    N, C, H, W = x1_nchw.shape
    assert x2_nchw.shape == (N, C, H, W)
    HW = H * W

    io_dtype = x1_nchw.dtype
    io_bytes = jnp.dtype(io_dtype).itemsize

    # Free reshape: NCHW -> (N, C, H*W). No transpose, no extra HBM traffic.
    x1 = x1_nchw.reshape(N, C, HW)
    x2 = x2_nchw.reshape(N, C, HW)

    tile_n, HW128, vmem_limit = _pick_tile_n(C, HW, N, io_bytes)
    if HW128 != HW:
        # Only a <=127-lane 128-alignment pad (zeros -> no NaNs downstream);
        # no pad-to-tile_n multiple is ever needed.
        pad = ((0, 0), (0, 0), (0, HW128 - HW))
        x1 = jnp.pad(x1, pad)
        x2 = jnp.pad(x2, pad)

    (wf1, wf2, bf, wa1, ba1, wa2, ba2) = params
    # Stack the two attention convs into one matmul (halves MXU pushes/pops).
    w_att = jnp.concatenate([wa1, wa2], axis=0)     # (2C, C)
    b_att = jnp.concatenate([ba1, ba2], axis=0)     # (2C, 1) f32
    if io_dtype == jnp.bfloat16:
        # bf16 I/O path: keep the MXU operands bf16; biases stay f32.
        wf1 = wf1.astype(jnp.bfloat16)
        wf2 = wf2.astype(jnp.bfloat16)
        w_att = w_att.astype(jnp.bfloat16)

    x_spec = pl.BlockSpec((1, C, tile_n), lambda n, j: (n, 0, j))
    wf_spec = pl.BlockSpec((C, C), lambda n, j: (0, 0))
    bf_spec = pl.BlockSpec((C, 1), lambda n, j: (0, 0))
    wa_spec = pl.BlockSpec((2 * C, C), lambda n, j: (0, 0))
    ba_spec = pl.BlockSpec((2 * C, 1), lambda n, j: (0, 0))

    grid = (N, HW128 // tile_n)

    # Advisory cost estimate (padded element count, weights included).
    M = N * HW128
    flops = 8 * M * C * C + 10 * M * C
    transcendentals = 2 * M * C
    weight_bytes = 4 * (4 * C * C + 3 * C)
    bytes_accessed = 4 * M * C * io_bytes + weight_bytes

    o1, o2 = pl.pallas_call(
        _fusion_attention_kernel,
        out_shape=(
            jax.ShapeDtypeStruct((N, C, HW128), io_dtype),
            jax.ShapeDtypeStruct((N, C, HW128), io_dtype),
        ),
        grid_spec=pltpu.PrefetchScalarGridSpec(
            num_scalar_prefetch=0,
            grid=grid,
            in_specs=[
                x_spec, x_spec,
                wf_spec, wf_spec, bf_spec,
                wa_spec, ba_spec,
            ],
            out_specs=[x_spec, x_spec],
        ),
        compiler_params=pltpu.CompilerParams(
            dimension_semantics=("parallel", "parallel"),
            vmem_limit_bytes=int(vmem_limit),
        ),
        cost_estimate=pl.CostEstimate(
            flops=flops,
            transcendentals=transcendentals,
            bytes_accessed=bytes_accessed,
        ),
    )(x1, x2, wf1, wf2, bf, w_att, b_att)

    if HW128 != HW:
        o1 = o1[:, :, :HW]
        o2 = o2[:, :, :HW]
    return o1.reshape(N, C, H, W), o2.reshape(N, C, H, W)


# ---------------------------------------------------------------------------
# Parameters (synthetic, deterministic) — inference BN folded into weights
# ---------------------------------------------------------------------------
def make_params(key, in_channels, out_channels, eps=1e-5):
    """Synthetic params matching the module's __init__ shapes.

    PyTorch conv weights are (Cout, Cin, 1, 1); stored here as (Cout, Cin) so
    the 1x1 conv is a left-matmul over the channel axis. Inference-mode BN is
    folded: scale multiplied into the weight rows, bias kept as (Cout, 1).
    """
    ks = jax.random.split(key, 6)
    C2, C = in_channels, out_channels
    assert C2 == 2 * C, "Fusion_Attention_Module is used with in_channels == 2*out_channels"

    def w(k, cout, cin):
        return jax.random.normal(k, (cout, cin), jnp.float32) * (1.0 / np.sqrt(cin))

    w_fusion = w(ks[0], C, C2)     # (C, 2C)
    wa1 = w(ks[1], C, C)
    wa2 = w(ks[2], C, C)

    def bn(k):
        k1, k2, k3, k4 = jax.random.split(k, 4)
        gamma = 1.0 + 0.1 * jax.random.normal(k1, (C,), jnp.float32)
        beta = 0.1 * jax.random.normal(k2, (C,), jnp.float32)
        mean = 0.1 * jax.random.normal(k3, (C,), jnp.float32)
        var = jax.nn.softplus(jax.random.normal(k4, (C,), jnp.float32)) + 0.5
        scale = gamma / jnp.sqrt(var + eps)
        bias = beta - mean * scale
        return scale, bias

    sf, bf = bn(ks[3])
    sa1, ba1 = bn(ks[4])
    sa2, ba2 = bn(ks[5])

    # Fold BN scale into the conv weights (per output channel == per row).
    w_fusion = w_fusion * sf[:, None]
    wa1 = wa1 * sa1[:, None]
    wa2 = wa2 * sa2[:, None]

    # Split the fusion weight along the concat (input-channel) axis.
    wf1, wf2 = w_fusion[:, :C], w_fusion[:, C:]

    return (wf1, wf2, bf[:, None], wa1, ba1[:, None], wa2, ba2[:, None])


# ---------------------------------------------------------------------------
# Pure-JAX reference for verification
# ---------------------------------------------------------------------------
def fusion_attention_ref(x1, x2, params):
    (wf1, wf2, bf, wa1, ba1, wa2, ba2) = params
    N, C, H, W = x1.shape
    a = x1.reshape(N, C, H * W).astype(jnp.float32)
    b = x2.reshape(N, C, H * W).astype(jnp.float32)
    f = jnp.maximum(
        jnp.einsum('oc,ncs->nos', wf1, a)
        + jnp.einsum('oc,ncs->nos', wf2, b) + bf[None], 0.0)
    att1 = jax.nn.sigmoid(jnp.einsum('oc,ncs->nos', wa1, f) + ba1[None])
    att2 = jax.nn.sigmoid(jnp.einsum('oc,ncs->nos', wa2, f) + ba2[None])
    o1 = jnp.maximum(a * att1, 0.0).reshape(N, C, H, W)
    o2 = jnp.maximum(b * att2, 0.0).reshape(N, C, H, W)
    return o1.astype(x1.dtype), o2.astype(x2.dtype)


if __name__ == "__main__":
    key = jax.random.PRNGKey(0)
    k1, k2, kp = jax.random.split(key, 3)

    N, C, H, W = 2, 4, 16, 16          # x1, x2 each have out_channels=C channels
    in_channels, out_channels = 2 * C, C

    x1 = jax.random.normal(k1, (N, C, H, W), jnp.float32)
    x2 = jax.random.normal(k2, (N, C, H, W), jnp.float32)
    params = make_params(kp, in_channels, out_channels)

    o1, o2 = fusion_attention_pallas(x1, x2, params)
    o1 = jax.block_until_ready(o1)
    o2 = jax.block_until_ready(o2)

    r1, r2 = fusion_attention_ref(x1, x2, params)
    assert o1.shape == (N, C, H, W) and o2.shape == (N, C, H, W)
    np.testing.assert_allclose(np.asarray(o1), np.asarray(r1), rtol=1e-5, atol=1e-5)
    np.testing.assert_allclose(np.asarray(o2), np.asarray(r2), rtol=1e-5, atol=1e-5)

    print("KERNEL_OK")
</pallas_src>

<mosaic_0001>
module attributes {stable_mosaic.version = 11 : i64} {
  func.func @_fusion_attention_kernel(%arg0: i32, %arg1: i32, %arg2: memref<1x4x256xf32, #tpu.memory_space<vmem>>, %arg3: memref<1x4x256xf32, #tpu.memory_space<vmem>>, %arg4: memref<4x4xf32, #tpu.memory_space<vmem>>, %arg5: memref<4x4xf32, #tpu.memory_space<vmem>>, %arg6: memref<4x1xf32, #tpu.memory_space<vmem>>, %arg7: memref<8x4xf32, #tpu.memory_space<vmem>>, %arg8: memref<8x1xf32, #tpu.memory_space<vmem>>, %arg9: memref<1x4x256xf32, #tpu.memory_space<vmem>>, %arg10: memref<1x4x256xf32, #tpu.memory_space<vmem>>) attributes {dimension_semantics = [#tpu.dimension_semantics<parallel>, #tpu.dimension_semantics<parallel>], iteration_bounds = array<i64: 2, 1>, scalar_prefetch = 0 : i64, scratch_operands = 0 : i64, tpu.core_type = #tpu.core_type<tc>, window_params = [{transform_indices = @transform_0, window_bounds = array<i64: 1, 4, 256>}, {transform_indices = @transform_1, window_bounds = array<i64: 1, 4, 256>}, {pipeline_mode = #tpu.pipeline_mode<synchronous>, transform_indices = @transform_2, window_bounds = array<i64: 4, 4>}, {pipeline_mode = #tpu.pipeline_mode<synchronous>, transform_indices = @transform_3, window_bounds = array<i64: 4, 4>}, {pipeline_mode = #tpu.pipeline_mode<synchronous>, transform_indices = @transform_4, window_bounds = array<i64: 4, 1>}, {pipeline_mode = #tpu.pipeline_mode<synchronous>, transform_indices = @transform_5, window_bounds = array<i64: 8, 4>}, {pipeline_mode = #tpu.pipeline_mode<synchronous>, transform_indices = @transform_6, window_bounds = array<i64: 8, 1>}, {transform_indices = @transform_7, window_bounds = array<i64: 1, 4, 256>}, {transform_indices = @transform_8, window_bounds = array<i64: 1, 4, 256>}]} {
    %c0 = arith.constant 0 : index
    %c0_0 = arith.constant 0 : index
    %c0_1 = arith.constant 0 : index
    %0 = vector.load %arg2[%c0, %c0_0, %c0_1] : memref<1x4x256xf32, #tpu.memory_space<vmem>>, vector<1x4x256xf32>
    %1 = vector.shape_cast %0 : vector<1x4x256xf32> to vector<4x256xf32>
    %c0_2 = arith.constant 0 : index
    %c0_3 = arith.constant 0 : index
    %c0_4 = arith.constant 0 : index
    %2 = vector.load %arg3[%c0_2, %c0_3, %c0_4] : memref<1x4x256xf32, #tpu.memory_space<vmem>>, vector<1x4x256xf32>
    %3 = vector.shape_cast %2 : vector<1x4x256xf32> to vector<4x256xf32>
    %c0_5 = arith.constant 0 : index
    %c0_6 = arith.constant 0 : index
    %4 = vector.load %arg6[%c0_5, %c0_6] : memref<4x1xf32, #tpu.memory_space<vmem>>, vector<4x1xf32>
    %c0_7 = arith.constant 0 : index
    %c0_8 = arith.constant 0 : index
    %5 = vector.load %arg8[%c0_7, %c0_8] : memref<8x1xf32, #tpu.memory_space<vmem>>, vector<8x1xf32>
    %c0_9 = arith.constant 0 : index
    %c0_10 = arith.constant 0 : index
    %6 = vector.load %arg4[%c0_9, %c0_10] : memref<4x4xf32, #tpu.memory_space<vmem>>, vector<4x4xf32>
    %c0_11 = arith.constant 0 : index
    %c0_12 = arith.constant 0 : index
    %7 = vector.load %arg5[%c0_11, %c0_12] : memref<4x4xf32, #tpu.memory_space<vmem>>, vector<4x4xf32>
    %c0_13 = arith.constant 0 : index
    %c0_14 = arith.constant 0 : index
    %8 = vector.load %arg7[%c0_13, %c0_14] : memref<8x4xf32, #tpu.memory_space<vmem>>, vector<8x4xf32>
    %9 = vector.extract_strided_slice %6 {offsets = [0, 0], sizes = [4, 1], strides = [1, 1]} : vector<4x4xf32> to vector<4x1xf32>
    %10 = vector.extract_strided_slice %1 {offsets = [0, 0], sizes = [1, 256], strides = [1, 1]} : vector<4x256xf32> to vector<1x256xf32>
    %11 = vector.broadcast %9 : vector<4x1xf32> to vector<4x256xf32>
    %12 = vector.broadcast %10 : vector<1x256xf32> to vector<4x256xf32>
    %13 = arith.mulf %11, %12 : vector<4x256xf32>
    %14 = vector.broadcast %4 : vector<4x1xf32> to vector<4x256xf32>
    %15 = arith.addf %14, %13 : vector<4x256xf32>
    %16 = vector.extract_strided_slice %7 {offsets = [0, 0], sizes = [4, 1], strides = [1, 1]} : vector<4x4xf32> to vector<4x1xf32>
    %17 = vector.extract_strided_slice %3 {offsets = [0, 0], sizes = [1, 256], strides = [1, 1]} : vector<4x256xf32> to vector<1x256xf32>
    %18 = vector.broadcast %16 : vector<4x1xf32> to vector<4x256xf32>
    %19 = vector.broadcast %17 : vector<1x256xf32> to vector<4x256xf32>
    %20 = arith.mulf %18, %19 : vector<4x256xf32>
    %21 = arith.addf %15, %20 : vector<4x256xf32>
    %22 = vector.extract_strided_slice %6 {offsets = [0, 1], sizes = [4, 1], strides = [1, 1]} : vector<4x4xf32> to vector<4x1xf32>
    %23 = vector.extract_strided_slice %1 {offsets = [1, 0], sizes = [1, 256], strides = [1, 1]} : vector<4x256xf32> to vector<1x256xf32>
    %24 = vector.broadcast %22 : vector<4x1xf32> to vector<4x256xf32>
    %25 = vector.broadcast %23 : vector<1x256xf32> to vector<4x256xf32>
    %26 = arith.mulf %24, %25 : vector<4x256xf32>
    %27 = arith.addf %21, %26 : vector<4x256xf32>
    %28 = vector.extract_strided_slice %7 {offsets = [0, 1], sizes = [4, 1], strides = [1, 1]} : vector<4x4xf32> to vector<4x1xf32>
    %29 = vector.extract_strided_slice %3 {offsets = [1, 0], sizes = [1, 256], strides = [1, 1]} : vector<4x256xf32> to vector<1x256xf32>
    %30 = vector.broadcast %28 : vector<4x1xf32> to vector<4x256xf32>
    %31 = vector.broadcast %29 : vector<1x256xf32> to vector<4x256xf32>
    %32 = arith.mulf %30, %31 : vector<4x256xf32>
    %33 = arith.addf %27, %32 : vector<4x256xf32>
    %34 = vector.extract_strided_slice %6 {offsets = [0, 2], sizes = [4, 1], strides = [1, 1]} : vector<4x4xf32> to vector<4x1xf32>
    %35 = vector.extract_strided_slice %1 {offsets = [2, 0], sizes = [1, 256], strides = [1, 1]} : vector<4x256xf32> to vector<1x256xf32>
    %36 = vector.broadcast %34 : vector<4x1xf32> to vector<4x256xf32>
    %37 = vector.broadcast %35 : vector<1x256xf32> to vector<4x256xf32>
    %38 = arith.mulf %36, %37 : vector<4x256xf32>
    %39 = arith.addf %33, %38 : vector<4x256xf32>
    %40 = vector.extract_strided_slice %7 {offsets = [0, 2], sizes = [4, 1], strides = [1, 1]} : vector<4x4xf32> to vector<4x1xf32>
    %41 = vector.extract_strided_slice %3 {offsets = [2, 0], sizes = [1, 256], strides = [1, 1]} : vector<4x256xf32> to vector<1x256xf32>
    %42 = vector.broadcast %40 : vector<4x1xf32> to vector<4x256xf32>
    %43 = vector.broadcast %41 : vector<1x256xf32> to vector<4x256xf32>
    %44 = arith.mulf %42, %43 : vector<4x256xf32>
    %45 = arith.addf %39, %44 : vector<4x256xf32>
    %46 = vector.extract_strided_slice %6 {offsets = [0, 3], sizes = [4, 1], strides = [1, 1]} : vector<4x4xf32> to vector<4x1xf32>
    %47 = vector.extract_strided_slice %1 {offsets = [3, 0], sizes = [1, 256], strides = [1, 1]} : vector<4x256xf32> to vector<1x256xf32>
    %48 = vector.broadcast %46 : vector<4x1xf32> to vector<4x256xf32>
    %49 = vector.broadcast %47 : vector<1x256xf32> to vector<4x256xf32>
    %50 = arith.mulf %48, %49 : vector<4x256xf32>
    %51 = arith.addf %45, %50 : vector<4x256xf32>
    %52 = vector.extract_strided_slice %7 {offsets = [0, 3], sizes = [4, 1], strides = [1, 1]} : vector<4x4xf32> to vector<4x1xf32>
    %53 = vector.extract_strided_slice %3 {offsets = [3, 0], sizes = [1, 256], strides = [1, 1]} : vector<4x256xf32> to vector<1x256xf32>
    %54 = vector.broadcast %52 : vector<4x1xf32> to vector<4x256xf32>
    %55 = vector.broadcast %53 : vector<1x256xf32> to vector<4x256xf32>
    %56 = arith.mulf %54, %55 : vector<4x256xf32>
    %57 = arith.addf %51, %56 : vector<4x256xf32>
    %cst = arith.constant 0.000000e+00 : f32
    %58 = vector.broadcast %cst : f32 to vector<4x256xf32>
    %59 = arith.maximumf %57, %58 : vector<4x256xf32>
    %60 = vector.extract_strided_slice %8 {offsets = [0, 0], sizes = [8, 1], strides = [1, 1]} : vector<8x4xf32> to vector<8x1xf32>
    %61 = vector.extract_strided_slice %59 {offsets = [0, 0], sizes = [1, 256], strides = [1, 1]} : vector<4x256xf32> to vector<1x256xf32>
    %62 = vector.broadcast %60 : vector<8x1xf32> to vector<8x256xf32>
    %63 = vector.broadcast %61 : vector<1x256xf32> to vector<8x256xf32>
    %64 = arith.mulf %62, %63 : vector<8x256xf32>
    %65 = vector.broadcast %5 : vector<8x1xf32> to vector<8x256xf32>
    %66 = arith.addf %65, %64 : vector<8x256xf32>
    %67 = vector.extract_strided_slice %8 {offsets = [0, 1], sizes = [8, 1], strides = [1, 1]} : vector<8x4xf32> to vector<8x1xf32>
    %68 = vector.extract_strided_slice %59 {offsets = [1, 0], sizes = [1, 256], strides = [1, 1]} : vector<4x256xf32> to vector<1x256xf32>
    %69 = vector.broadcast %67 : vector<8x1xf32> to vector<8x256xf32>
    %70 = vector.broadcast %68 : vector<1x256xf32> to vector<8x256xf32>
    %71 = arith.mulf %69, %70 : vector<8x256xf32>
    %72 = arith.addf %66, %71 : vector<8x256xf32>
    %73 = vector.extract_strided_slice %8 {offsets = [0, 2], sizes = [8, 1], strides = [1, 1]} : vector<8x4xf32> to vector<8x1xf32>
    %74 = vector.extract_strided_slice %59 {offsets = [2, 0], sizes = [1, 256], strides = [1, 1]} : vector<4x256xf32> to vector<1x256xf32>
    %75 = vector.broadcast %73 : vector<8x1xf32> to vector<8x256xf32>
    %76 = vector.broadcast %74 : vector<1x256xf32> to vector<8x256xf32>
    %77 = arith.mulf %75, %76 : vector<8x256xf32>
    %78 = arith.addf %72, %77 : vector<8x256xf32>
    %79 = vector.extract_strided_slice %8 {offsets = [0, 3], sizes = [8, 1], strides = [1, 1]} : vector<8x4xf32> to vector<8x1xf32>
    %80 = vector.extract_strided_slice %59 {offsets = [3, 0], sizes = [1, 256], strides = [1, 1]} : vector<4x256xf32> to vector<1x256xf32>
    %81 = vector.broadcast %79 : vector<8x1xf32> to vector<8x256xf32>
    %82 = vector.broadcast %80 : vector<1x256xf32> to vector<8x256xf32>
    %83 = arith.mulf %81, %82 : vector<8x256xf32>
    %84 = arith.addf %78, %83 : vector<8x256xf32>
    %85 = arith.negf %84 : vector<8x256xf32>
    %86 = math.exp %85 : vector<8x256xf32>
    %cst_15 = arith.constant 1.000000e+00 : f32
    %87 = vector.broadcast %cst_15 : f32 to vector<8x256xf32>
    %88 = arith.addf %87, %86 : vector<8x256xf32>
    %89 = arith.divf %87, %88 : vector<8x256xf32>
    %90 = vector.extract_strided_slice %89 {offsets = [0, 0], sizes = [4, 256], strides = [1, 1]} : vector<8x256xf32> to vector<4x256xf32>
    %91 = vector.extract_strided_slice %89 {offsets = [4, 0], sizes = [4, 256], strides = [1, 1]} : vector<8x256xf32> to vector<4x256xf32>
    %92 = arith.mulf %1, %90 : vector<4x256xf32>
    %cst_16 = arith.constant 0.000000e+00 : f32
    %93 = vector.broadcast %cst_16 : f32 to vector<4x256xf32>
    %94 = arith.maximumf %92, %93 : vector<4x256xf32>
    %c0_17 = arith.constant 0 : index
    %c0_18 = arith.constant 0 : index
    %c0_19 = arith.constant 0 : index
    %95 = vector.load %arg9[%c0_17, %c0_18, %c0_19] : memref<1x4x256xf32, #tpu.memory_space<vmem>>, vector<1x4x256xf32>
    %96 = vector.shape_cast %95 : vector<1x4x256xf32> to vector<4x256xf32>
    %97 = vector.shape_cast %94 : vector<4x256xf32> to vector<1x4x256xf32>
    tpu.vector_store %arg9[%c0_17, %c0_18, %c0_19], %97 {strides = array<i32>} : memref<1x4x256xf32, #tpu.memory_space<vmem>>, vector<1x4x256xf32>,
    %98 = arith.mulf %3, %91 : vector<4x256xf32>
    %cst_20 = arith.constant 0.000000e+00 : f32
    %99 = vector.broadcast %cst_20 : f32 to vector<4x256xf32>
    %100 = arith.maximumf %98, %99 : vector<4x256xf32>
    %c0_21 = arith.constant 0 : index
    %c0_22 = arith.constant 0 : index
    %c0_23 = arith.constant 0 : index
    %101 = vector.load %arg10[%c0_21, %c0_22, %c0_23] : memref<1x4x256xf32, #tpu.memory_space<vmem>>, vector<1x4x256xf32>
    %102 = vector.shape_cast %101 : vector<1x4x256xf32> to vector<4x256xf32>
    %103 = vector.shape_cast %100 : vector<4x256xf32> to vector<1x4x256xf32>
    tpu.vector_store %arg10[%c0_21, %c0_22, %c0_23], %103 {strides = array<i32>} : memref<1x4x256xf32, #tpu.memory_space<vmem>>, vector<1x4x256xf32>,
    return
  }
  func.func @transform_0(%arg0: i32, %arg1: i32) -> (i32, i32, i32) {
    %c0_i32 = arith.constant 0 : i32
    %c0_i32_0 = arith.constant 0 : i32
    return %arg0, %c0_i32, %arg1 : i32, i32, i32
  }
  func.func @transform_1(%arg0: i32, %arg1: i32) -> (i32, i32, i32) {
    %c0_i32 = arith.constant 0 : i32
    %c0_i32_0 = arith.constant 0 : i32
    return %arg0, %c0_i32, %arg1 : i32, i32, i32
  }
  func.func @transform_2(%arg0: i32, %arg1: i32) -> (i32, i32) {
    %c0_i32 = arith.constant 0 : i32
    %c0_i32_0 = arith.constant 0 : i32
    %c0_i32_1 = arith.constant 0 : i32
    return %c0_i32, %c0_i32_0 : i32, i32
  }
  func.func @transform_3(%arg0: i32, %arg1: i32) -> (i32, i32) {
    %c0_i32 = arith.constant 0 : i32
    %c0_i32_0 = arith.constant 0 : i32
    %c0_i32_1 = arith.constant 0 : i32
    return %c0_i32, %c0_i32_0 : i32, i32
  }
  func.func @transform_4(%arg0: i32, %arg1: i32) -> (i32, i32) {
    %c0_i32 = arith.constant 0 : i32
    %c0_i32_0 = arith.constant 0 : i32
    %c0_i32_1 = arith.constant 0 : i32
    return %c0_i32, %c0_i32_0 : i32, i32
  }
  func.func @transform_5(%arg0: i32, %arg1: i32) -> (i32, i32) {
    %c0_i32 = arith.constant 0 : i32
    %c0_i32_0 = arith.constant 0 : i32
    %c0_i32_1 = arith.constant 0 : i32
    return %c0_i32, %c0_i32_0 : i32, i32
  }
  func.func @transform_6(%arg0: i32, %arg1: i32) -> (i32, i32) {
    %c0_i32 = arith.constant 0 : i32
    %c0_i32_0 = arith.constant 0 : i32
    %c0_i32_1 = arith.constant 0 : i32
    return %c0_i32, %c0_i32_0 : i32, i32
  }
  func.func @transform_7(%arg0: i32, %arg1: i32) -> (i32, i32, i32) {
    %c0_i32 = arith.constant 0 : i32
    %c0_i32_0 = arith.constant 0 : i32
    return %arg0, %c0_i32, %arg1 : i32, i32, i32
  }
  func.func @transform_8(%arg0: i32, %arg1: i32) -> (i32, i32, i32) {
    %c0_i32 = arith.constant 0 : i32
    %c0_i32_0 = arith.constant 0 : i32
    return %arg0, %c0_i32, %arg1 : i32, i32, i32
  }
}

</mosaic_0001>

<bundles_post_ra>
// kernel: tpu_custom_call.1
= control target key start
LH: loop header
LB: loop body
LE: loop exit
PB: predicated region body
PF: predicated region fallthrough
CT: control target
= control target key end

     0   :  { %s1470_s0 = inlined_call_operand.vmem [shape: f32[2,4,256], index: 0, kind: input, shape index: {}]   ;;  %s1471_s1 = inlined_call_operand.hbm [shape: f32[2,4,256], index: 1, kind: input, shape index: {}]   ;;  %s1472_s2 = inlined_call_operand.vmem [shape: f32[4,4], index: 2, kind: input, shape index: {}]   ;;  %s1473_s3 = inlined_call_operand.vmem [shape: f32[4,4], index: 3, kind: input, shape index: {}]   ;;  %s1474_s4 = inlined_call_operand.vmem [shape: f32[4,1], index: 4, kind: input, shape index: {}]   ;;  %s1475_s5 = inlined_call_operand.vmem [shape: f32[8,4], index: 5, kind: input, shape index: {}]   ;;  %s1476_s6 = inlined_call_operand.vmem [shape: f32[8,1], index: 6, kind: input, shape index: {}]   ;;  %s1477_s7 = inlined_call_operand.hbm [shape: f32[2,4,256], index: 7, kind: output, shape index: {0}]   ;;  %s1478_s8 = inlined_call_operand.hbm [shape: f32[2,4,256], index: 8, kind: output, shape index: {1}]  }
   0x1   :  { %1480 = sst [smem:[#allocation12_spill]] %s1470_s0 }
   0x2   :  { %14 = vsyncpa [#allocation3], 0 }
   0x3   :  { %16 = vsyncpa [#allocation3 + $0x1], 0 }
   0x4   :  { %17 = vsyncpa [#allocation4], 0 }
   0x5   :  { %19 = vsyncpa [#allocation4 + $0x1], 0 }
   0x6   :  { %20 = vsyncpa [#allocation7], 0 }
   0x7   :  { %22 = vsyncpa [#allocation7 + $0x1], 0  ;;  %s1197_s27 = smov 0   ;;  %s1199_s28 = smov 0  }
   0x8   :  { %s1201_s29 = smov 0   ;;  %s1203_s30 = smov 0  }
   0x9   :  { %s1205_s9 = smov 0   ;;  %s1207_s10 = smov 0  }
   0xa LB: > { %s887_s11 = sadd.s32 4294967295, %s1143_s10   ;;  %s888_s12 = sadd.s32 4294967294, %s1143_s10   ;;  %s1143_s10 = sphi %s1207_s10, %s28_s10   ;;  %s1139_s9 = sphi %s1205_s9, %s1495_s9   ;;  %s1135_s30 = sphi %s1203_s30, %s1494_s30   ;;  %s1131_s29 = sphi %s1201_s29, %s1493_s29   ;;  %s1127_s28 = sphi %s1199_s28, %s1492_s28   ;;  %s1123_s27 = sphi %s1197_s27, %s1491_s27  }
   0xb   : > { %s40_s13 = sadd.s32 1, %s1139_s9  ;;  %s77_s14 = sadd.s32 1, %s1131_s29 }
   0xc   : > { %p42_p0 = scmp.ge.s32.totalorder %s40_s13, 2  ;;  %p84_p1 = scmp.ne.s32.totalorder %s1131_s29, %s1127_s28 }
   0xd   : > { %p85_p2 = scmp.eq.s32.totalorder %s1143_s10, 0  ;;  %p90_p3 = scmp.ne.s32.totalorder %s1127_s28, %s1123_s27 }
   0xe   : > { %s1497_s13 = smov (%p42_p0, %s40_s13), 0  ;;  %p91_p5 = scmp.eq.s32.totalorder %s887_s11, 0 }
   0xf   : > { %1481 = sst [smem:[#allocation11_spill]] %s1497_s13  ;;  %p1238_p4 = por %p85_p2, %p84_p1 }
  0x10   : > { %s72_s16 = ssub.s32 %s1139_s9, %s1497_s13  ;;  %p221_p6 = scmp.eq.s32.totalorder %s887_s11, 1 }
  0x11   : > { %p75_p7 = scmp.eq.s32.totalorder %s72_s16, 0  ;;  %p1244_p8 = por %p91_p5, %p90_p3 }
  0x12   : > { %p1248_p9 = por %p221_p6, %p84_p1  ;;  %p227_p10 = scmp.eq.s32.totalorder %s888_s12, 1 }
  0x13   : > { %s1253_s19 = scalar_select %p75_p7, %s1131_s29, %s77_s14  }
  0x14   : > { %p1255_p11 = por %p227_p10, %p90_p3  ;;  %p931_p13 = scmp.lt.s32.totalorder %s1143_s10, 2 }
  0x15   : > { %s303_s21 = sand.u32 1, %s1131_s29   ;;  %s910_s23 = sshll.u32 %s1139_s9, 7 }
  0x16   : > { %s1485_s20 = scalar_select %p1255_p11, 1, 0 }
  0x17   : > { %s891_s22 = sshll.u32 %s303_s21, 3  ;;  %s315_s26 = scalar_lea.hbm %s1471_s1, %s910_s23 }
  0x18   : > { %s307_s11 = scalar_lea.vmem [#allocation2], %s891_s22  ;;  %p1268_p0 = pnand %p931_p13, %p1238_p4 }
  0x19   : > { %s317_s16 = sshll.u32 %s307_s11, 4  ;;  %p894_p1 = scmp.ge.s32.totalorder %s1143_s10, 1  ;;  %s318_s16 = int_to_ptr.vmem [resolvable:$true] %s317_s16 }
  0x1a   : > { %p322_p2 = scmp.lt.s32.totalorder %s1143_s10, 3  ;;  %s304_s14 = scalar_lea.sflag [#allocation3], %s303_s21 }
  0x1b   : > { %p1007_p3 = pneg %p1268_p0  ;;  %s1018_s13 = scalar_lea.vmem %s318_s16, 128 }
  0x1c   : > { %p1019_p5 = scmp.ne.s32.totalorder %s318_s16, %s1018_s13  ;;  %s1145_s24 = smov [#allocation2]  }
  0x1d   : > { %s1023_s23 = sshll.u32 %s1145_s24, 4  ;;  %s1024_s23 = int_to_ptr.vmem [resolvable:$false] %s1023_s23 }
  0x1e   : > { %p1021_p6 = pnand %p1019_p5, %p1007_p3  ;;  %s1025_s22 = scalar_lea.vmem %s1024_s23, 256 }
  0x1f   : > { %p1026_p10 = scmp.lt.s32.totalorder %s318_s16, %s1024_s23  ;;  %p1027_p12 = scmp.lt.s32.totalorder %s1025_s22, %s1018_s13 }
  0x20   : > { %p1022_p7 = pneg %p1021_p6 }
  0x21   : > { %p1028_p4 = por %p1027_p12, %p1026_p10 }
  0x23   : > { %p1029_p13 = pnand %p1028_p4, %p1022_p7 }
  0x25   : > { %1032 = shalt.err (!%p1029_p13)
}
  0x26   : > { %923 = dma.hbm_to_vmem [thread:$0]  (!%p1268_p0), %s315_s26, 128, %s318_s16, %s304_s14  }
  0x27   : > { %p323_p11 = pnand %p894_p1, %p322_p2 }
  0x28   : > { %s1283_s15 = sand.u32 (!%p323_p11), 1, %s1127_s28  }
  0x29   : > { %326 = sbr.rel (%p323_p11) target bundleno = 287 (0x11f), region = 48  ;;  %s1286_s21 = sshll.u32 (!%p323_p11), %s1283_s15, 3 }
  0x2a   : > { %s329_s13 = scalar_lea.sflag (!%p323_p11), [#allocation3], %s1283_s15  ;;  %s332_s25 = scalar_lea.vmem (!%p323_p11), [#allocation2], %s1286_s21 }
  0x2e   : > { %1110 = dma.done.wait (%p1244_p8), %s329_s13, 128  }
  0x2f   : > { %1112 = vsyncadd (%p1244_p8), %s329_s13, 4294967168  ;;  %v1146_v0 = vmov 0   ;;  %v397_v1 = vld [vmem:[%s1473_s3] sm:$0xf]  ;;  %v1147_v4 = vmov 1   ;;  %v1148_v5 = vmov 2   ;;  %v405_v9 = vlaneseq }
  0x30   : > { %986 = vset.pattern.permute.xlu1 %v1146_v0  ;;  %985 = vset.pattern.permute.xlu0 %v1146_v0  ;;  %v396_v2 = vld [vmem:[%s1472_s2] sm:$0xf]  ;;  %v1149_v6 = vmov 3   ;;  %p380_p8 = scmp.lt.s32.totalorder %s1135_s30, 1  ;;  %s1487_s0 = sld [smem:[#allocation12_spill]] }
  0x31   : > { %434 = vperm.xlu1 %986, %v397_v1   ;;  %401 = vperm.xlu0 %985, %v396_v2   ;;  %v394_v3 = vld [vmem:[%s1474_s4] sm:$0xf]  ;;  %v1311_v10 = vshrl.u32 %v405_v9, 7  ;;  %s371_s24 = scalar_lea.vmem [#allocation5], %s1286_s21  ;;  %s378_s23 = scalar_lea.vmem [#allocation6], %s1286_s21 }
  0x32   : > { %v395_v7 = vld [vmem:[%s1476_s6] sm:$0xff]  ;;  %s381_s26 = scalar_select %p380_p8, %s1135_s30, 1 }
  0x33   : > { %v398_v8 = vld [vmem:[%s1475_s5] sm:$0xff]  ;;  %v1319_v12 = vsub.s32 0, %v1311_v10  ;;  %v411_v13 = vsub.s32 4, %v1311_v10  ;;  %v1330_v17 = vsub.s32 1, %v1311_v10  ;;  %v470_v18 = vsub.s32 5, %v1311_v10  ;;  %s734_s17 = sshll.u32 %s371_s24, 4  ;;  %s1396_s17 = int_to_ptr.vmem [resolvable:$true] %s734_s17 }
  0x34   : > { %s911_s11 = sshll.u32 %s381_s26, 3  ;;  %v1327_v16 = vld [vmem:[%s332_s25] sm:$0xff]  ;;  %v1342_v25 = vsub.s32 2, %v1311_v10  ;;  %v522_v26 = vsub.s32 6, %v1311_v10  ;;  %v1356_v39 = vsub.s32 3, %v1311_v10  ;;  %v574_v40 = vsub.s32 7, %v1311_v10 }
  0x35   : > { %987 = vset.pattern.permute.xlu1 %v1147_v4  ;;  %427 = vperm.xlu0 %985, %v394_v3   ;;  %v441_v19 = vrot.slane %v1327_v16, %v1319_v12  ;;  %v445_v20 = vrot.slane %v1327_v16, %v411_v13  ;;  %v493_v29 = vrot.slane %v1327_v16, %v1330_v17  ;;  %s912_s25 = sshll.u32 %s1135_s30, 7  ;;  %s750_s22 = sshll.u32 %s378_s23, 4  ;;  %s1403_s22 = int_to_ptr.vmem [resolvable:$true] %s750_s22 }
  0x36   : > { %461 = vperm.xlu1 %987, %v396_v2   ;;  %s387_s14 = scalar_lea.vmem %s1487_s0, %s911_s11  ;;  %v497_v30 = vrot.slane %v1327_v16, %v470_v18  ;;  %v545_v44 = vrot.slane %v1327_v16, %v1342_v25  ;;  %v549_v45 = vrot.slane %v1327_v16, %v522_v26  ;;  %v597_v9 = vrot.slane %v1327_v16, %v1356_v39  ;;  %s1394_s11 = scalar_lea.hbm %s1477_s7, %s912_s25 }
  0x37   : > { %v1316_v11 = vld [vmem:[%s387_s14] sm:$0xff]  ;;  %v451_v31 = vrot.slane %v441_v19, %v1319_v12  ;;  %v455_v32 = vrot.slane %v445_v20, %v1319_v12  ;;  %v503_v42 = vrot.slane %v493_v29, %v1330_v17  ;;  %v601_v10 = vrot.slane %v1327_v16, %v574_v40  ;;  %s1401_s12 = scalar_lea.hbm %s1478_s8, %s912_s25  ;;  %s713_s21 = scalar_lea.sflag [#allocation4], %s1283_s15 }
  0x38   : > { %v408_v14 = vrot.slane %v1316_v11, %v1319_v12  ;;  %v412_v15 = vrot.slane %v1316_v11, %v411_v13  ;;  %v467_v23 = vrot.slane %v1316_v11, %v1330_v17  ;;  %v471_v24 = vrot.slane %v1316_v11, %v470_v18  ;;  %s1033_s14 = scalar_lea.vmem %s1396_s17, 128  ;;  %s1150_s13 = smov [#allocation5]  }
  0x39   : > { %988 = vset.pattern.permute.xlu0 %v1147_v4  ;;  %v519_v37 = vrot.slane %v1316_v11, %v1342_v25  ;;  %v523_v38 = vrot.slane %v1316_v11, %v522_v26  ;;  %v507_v43 = vrot.slane %v497_v30, %v1330_v17  ;;  %v571_v57 = vrot.slane %v1316_v11, %v1356_v39  ;;  %p1034_p11 = scmp.ne.s32.totalorder %s1396_s17, %s1033_s14  ;;  %s1037_s26 = sshll.u32 %s1150_s13, 4  ;;  %s1038_s26 = int_to_ptr.vmem [resolvable:$false] %s1037_s26 }
  0x3a   : > { %989 = vset.pattern.permute.xlu1 %v1148_v5  ;;  %487 = vperm.xlu0 %988, %v397_v1   ;;  %v418_v21 = vrot.slane %v408_v14, %v1319_v12  ;;  %v422_v22 = vrot.slane %v412_v15, %v1319_v12  ;;  %v477_v35 = vrot.slane %v467_v23, %v1330_v17  ;;  %s1039_s0 = scalar_lea.vmem %s1038_s26, 256  ;;  %p1040_p1 = scmp.lt.s32.totalorder %s1396_s17, %s1038_s26 }
  0x3b   : > { %513 = vperm.xlu1 %989, %v396_v2   ;;  %v481_v36 = vrot.slane %v471_v24, %v1330_v17  ;;  %v529_v53 = vrot.slane %v519_v37, %v1342_v25  ;;  %v533_v54 = vrot.slane %v523_v38, %v1342_v25  ;;  %v575_v58 = vrot.slane %v1316_v11, %v574_v40  ;;  %p1035_p12 = pnand %p1034_p11, %p1248_p9  ;;  %p1041_p2 = scmp.lt.s32.totalorder %s1039_s0, %s1033_s14 }
  0x3c   : > { %v607_v23 = vrot.slane %v597_v9, %v1356_v39  ;;  %v611_v24 = vrot.slane %v601_v10, %v1356_v39 }
  0x3d   : > { %p1036_p0 = pneg %p1035_p12  ;;  %p1042_p3 = por %p1041_p2, %p1040_p1 }
  0x3e   : > { %990 = vset.pattern.permute.xlu0 %v1149_v6 }
  0x3f   : > { %539 = vperm.xlu1 %989, %v397_v1   ;;  %565 = vperm.xlu0 %990, %v396_v2   ;;  %v559_v2 = vrot.slane %v549_v45, %v1342_v25  ;;  %p1043_p5 = pnand %p1042_p3, %p1036_p0 }
  0x43   : > { %991 = vset.pattern.permute.xlu1 %v1149_v6  ;;  %993 = vset.pattern.permute.xlu0 %v1146_v0 }
  0x44   : > { %591 = vperm.xlu1 %991, %v397_v1   ;;  %635 = vperm.xlu0 %993, %v395_v7   ;;  %v555_v1 = vrot.slane %v545_v44, %v1342_v25 }
  0x48   : > { %992 = vset.pattern.permute.xlu1 %v1146_v0  ;;  %996 = vset.pattern.permute.xlu0 %v1149_v6  ;;  %v585_v6 = vrot.slane %v575_v58, %v1356_v39 }
  0x49   : > { %620 = vperm.xlu1 %992, %v398_v8   ;;  %673 = vperm.xlu0 %996, %v398_v8  }
  0x4d   : > { %994 = vset.pattern.permute.xlu1 %v1147_v4 }
  0x4e   : > { %641 = vperm.xlu1 %994, %v398_v8  }
  0x52   : > { %995 = vset.pattern.permute.xlu1 %v1148_v5  ;;  %v581_v5 = vrot.slane %v571_v57, %v1356_v39 }
  0x53   : > { %657 = vperm.xlu1 %995, %v398_v8  }
  0xac   : > { %v435_v27 = vpop.permute.xlu1 %434  ;;  %v402_v28 = vpop.permute.xlu0 %401 }
  0xad   : > { %v423_v33 = vmul.f32 %v418_v21, %v402_v28  ;;  %v424_v34 = vmul.f32 %v422_v22, %v402_v28  ;;  %v456_v46 = vmul.f32 %v451_v31, %v435_v27  ;;  %v457_v47 = vmul.f32 %v455_v32, %v435_v27 }
  0xb0   : > { %v428_v41 = vpop.permute.xlu0 %427 }
  0xb1   : > { %v430_v48 = vadd.f32 %v428_v41, %v423_v33  ;;  %v431_v49 = vadd.f32 %v428_v41, %v424_v34  ;;  %v462_v50 = vpop.permute.xlu1 %461 }
  0xb2   : > { %v482_v51 = vmul.f32 %v477_v35, %v462_v50  ;;  %v483_v52 = vmul.f32 %v481_v36, %v462_v50 }
  0xb3   : > { %v458_v55 = vadd.f32 %v456_v46, %v430_v48  ;;  %v459_v56 = vadd.f32 %v457_v47, %v431_v49 }
  0xb5   : > { %v484_v59 = vadd.f32 %v482_v51, %v458_v55  ;;  %v485_v60 = vadd.f32 %v483_v52, %v459_v56  ;;  %v488_v61 = vpop.permute.xlu0 %487 }
  0xb6   : > { %v508_v62 = vmul.f32 %v503_v42, %v488_v61  ;;  %v509_v63 = vmul.f32 %v507_v43, %v488_v61  ;;  %v514_v0 = vpop.permute.xlu1 %513 }
  0xb7   : > { %v534_v3 = vmul.f32 %v529_v53, %v514_v0  ;;  %v535_v4 = vmul.f32 %v533_v54, %v514_v0 }
  0xb8   : > { %v510_v7 = vadd.f32 %v508_v62, %v484_v59  ;;  %v511_v8 = vadd.f32 %v509_v63, %v485_v60 }
  0xba   : > { %v536_v13 = vadd.f32 %v534_v3, %v510_v7  ;;  %v537_v14 = vadd.f32 %v535_v4, %v511_v8  ;;  %v540_v15 = vpop.permute.xlu1 %539  ;;  %v566_v18 = vpop.permute.xlu0 %565 }
  0xbb   : > { %v560_v19 = vmul.f32 %v555_v1, %v540_v15  ;;  %v561_v20 = vmul.f32 %v559_v2, %v540_v15  ;;  %v586_v21 = vmul.f32 %v581_v5, %v566_v18  ;;  %v587_v22 = vmul.f32 %v585_v6, %v566_v18 }
  0xbd   : > { %v562_v26 = vadd.f32 %v560_v19, %v536_v13  ;;  %v563_v27 = vadd.f32 %v561_v20, %v537_v14 }
  0xbf   : > { %v588_v28 = vadd.f32 %v586_v21, %v562_v26  ;;  %v589_v29 = vadd.f32 %v587_v22, %v563_v27  ;;  %v592_v30 = vpop.permute.xlu1 %591  ;;  %v636_v41 = vpop.permute.xlu0 %635 }
  0xc0   : > { %v612_v31 = vmul.f32 %v607_v23, %v592_v30  ;;  %v613_v32 = vmul.f32 %v611_v24, %v592_v30 }
  0xc2   : > { %v614_v33 = vadd.f32 %v612_v31, %v588_v28  ;;  %v615_v34 = vadd.f32 %v613_v32, %v589_v29 }
  0xc4   : > { %v616_v35 = vmax.f32 %v614_v33, 0.0  ;;  %v617_v36 = vmax.f32 %v615_v34, 0.0  ;;  %v621_v37 = vpop.permute.xlu1 %620  ;;  %v674_v54 = vpop.permute.xlu0 %673 }
  0xc6   : > { %v626_v38 = vrot.slane %v616_v35, %v1319_v12  ;;  %v630_v40 = vrot.slane %v617_v36, %v1319_v12  ;;  %v647_v45 = vrot.slane %v616_v35, %v1330_v17  ;;  %v651_v46 = vrot.slane %v617_v36, %v1330_v17 }
  0xc7   : > { %v679_v51 = vrot.slane %v616_v35, %v1356_v39  ;;  %v683_v52 = vrot.slane %v617_v36, %v1356_v39  ;;  %v663_v53 = vrot.slane %v616_v35, %v1342_v25  ;;  %v667_v12 = vrot.slane %v617_v36, %v1342_v25 }
  0xc8   : > { %v631_v42 = vmul.f32 %v626_v38, %v621_v37  ;;  %v632_v43 = vmul.f32 %v630_v40, %v621_v37 }
  0xc9   : > { %v642_v44 = vpop.permute.xlu1 %641  ;;  %v684_v60 = vmul.f32 %v679_v51, %v674_v54  ;;  %v685_v17 = vmul.f32 %v683_v52, %v674_v54 }
  0xca   : > { %v638_v47 = vadd.f32 %v636_v41, %v631_v42  ;;  %v639_v48 = vadd.f32 %v636_v41, %v632_v43  ;;  %v652_v49 = vmul.f32 %v647_v45, %v642_v44  ;;  %v653_v50 = vmul.f32 %v651_v46, %v642_v44 }
  0xcc   : > { %v654_v56 = vadd.f32 %v652_v49, %v638_v47  ;;  %v655_v57 = vadd.f32 %v653_v50, %v639_v48 }
  0xce   : > { %v658_v55 = vpop.permute.xlu1 %657 }
  0xcf   : > { %v668_v58 = vmul.f32 %v663_v53, %v658_v55  ;;  %v669_v59 = vmul.f32 %v667_v12, %v658_v55 }
  0xd1   : > { %v670_v61 = vadd.f32 %v668_v58, %v654_v56  ;;  %v671_v62 = vadd.f32 %v669_v59, %v655_v57 }
  0xd3   : > { %v686_v63 = vadd.f32 %v684_v60, %v670_v61  ;;  %v687_v0 = vadd.f32 %v685_v17, %v671_v62 }
  0xd5   : > { %v900_v1 = vmul.f32 -1.442695, %v686_v63  ;;  %v901_v39 = vmul.f32 -1.442695, %v687_v0 }
  0xd7   : > { %997 = vpow2.f32 %v900_v1 }
  0xd8   : > { %999 = vpow2.f32 %v901_v39 }
  0xe4   : > { %v998_v25 = vpop.eup %997 }
  0xe5   : > { %v1000_v2 = vpop.eup %999  ;;  %v694_v3 = vadd.f32 1.0, %v998_v25 }
  0xe6   : > { %v695_v4 = vadd.f32 1.0, %v1000_v2 }
  0xe7   : > { %1001 = vrcp.f32 %v694_v3 }
  0xe8   : > { %1003 = vrcp.f32 %v695_v4 }
  0xf4   : > { %v1002_v5 = vpop.eup %1001 }
  0xf5   : > { %v1004_v6 = vpop.eup %1003 }
  0xf6   : > { %v702_v7 = vcombine.low %v1002_v5, %v1004_v6  ;;  %v707_v8 = vcombine.high %v1002_v5, %v1004_v6 }
  0xf8   : > { %v704_v9 = vmul.f32 %v702_v7, %v1316_v11  ;;  %v709_v10 = vmul.f32 %v707_v8, %v1327_v16 }
  0xfa   : > { %v705_v13 = vmax.f32 %v704_v9, 0.0  ;;  %v710_v14 = vmax.f32 %v709_v10, 0.0 }
  0xfc   : > { %706 = vst [vmem:[%s371_s24] sm:$0xff] %v705_v13  ;;  %711 = vst [vmem:[%s378_s23] sm:$0xff] %v710_v14 }
  0xfd   : > { %1046 = shalt.err (!%p1043_p5)
}
  0xfe   : > { %s1047_s25 = scalar_lea.hbm %s1394_s11, 128  ;;  %s1051_s30 = scalar_lea.hbm %s1477_s7, 256 }
  0xff   : > { %p1048_p6 = scmp.ne.s32.totalorder %s1394_s11, %s1047_s25  ;;  %p1052_p4 = scmp.lt.s32.totalorder %s1394_s11, %s1477_s7 }
 0x100   : > { %p1053_p13 = scmp.lt.s32.totalorder %s1051_s30, %s1047_s25 }
 0x101   : > { %p1049_p7 = pnand %p1048_p6, %p1248_p9 }
 0x102   : > { %p1054_p8 = por %p1053_p13, %p1052_p4 }
 0x103   : > { %p1050_p10 = pneg %p1049_p7 }
 0x105   : > { %p1055_p11 = pnand %p1054_p8, %p1050_p10 }
 0x107   : > { %1058 = shalt.err (!%p1055_p11)
}
 0x108   : > { %916 = dma.vmem_to_hbm [thread:$0]  (%p1248_p9), %s1396_s17, 128, %s1394_s11, %s713_s21  }
 0x109   : > { %s718_s0 = scalar_lea.sflag [#allocation7], %s1283_s15  ;;  %s1059_s14 = scalar_lea.vmem %s1403_s22, 128 }
 0x10a   : > { %p1060_p12 = scmp.ne.s32.totalorder %s1403_s22, %s1059_s14  ;;  %s1151_s26 = smov [#allocation6]  }
 0x10b   : > { %s1063_s25 = sshll.u32 %s1151_s26, 4  ;;  %s1064_s25 = int_to_ptr.vmem [resolvable:$false] %s1063_s25 }
 0x10c   : > { %p1061_p0 = pnand %p1060_p12, %p1248_p9  ;;  %s1065_s24 = scalar_lea.vmem %s1064_s25, 256 }
 0x10d   : > { %p1066_p2 = scmp.lt.s32.totalorder %s1403_s22, %s1064_s25  ;;  %p1067_p3 = scmp.lt.s32.totalorder %s1065_s24, %s1059_s14 }
 0x10e   : > { %p1062_p1 = pneg %p1061_p0 }
 0x10f   : > { %p1068_p5 = por %p1067_p3, %p1066_p2 }
 0x111   : > { %p1069_p6 = pnand %p1068_p5, %p1062_p1 }
 0x113   : > { %1072 = shalt.err (!%p1069_p6)
}
 0x114   : > { %s1073_s17 = scalar_lea.hbm %s1401_s12, 128  ;;  %s1077_s21 = scalar_lea.hbm %s1478_s8, 256 }
 0x115   : > { %p1074_p7 = scmp.ne.s32.totalorder %s1401_s12, %s1073_s17  ;;  %p1078_p13 = scmp.lt.s32.totalorder %s1401_s12, %s1478_s8 }
 0x116   : > { %p1079_p8 = scmp.lt.s32.totalorder %s1077_s21, %s1073_s17 }
 0x117   : > { %p1075_p10 = pnand %p1074_p7, %p1248_p9 }
 0x118   : > { %p1080_p11 = por %p1079_p8, %p1078_p13 }
 0x119   : > { %p1076_p4 = pneg %p1075_p10 }
 0x11b   : > { %p1081_p12 = pnand %p1080_p11, %p1076_p4 }
 0x11d   : > { %1084 = shalt.err (!%p1081_p12)
}
 0x11e   : > { %917 = dma.vmem_to_hbm [thread:$0]  (%p1248_p9), %s1403_s22, 128, %s1401_s12, %s718_s0  }
 0x11f PF: > { %s762_s16 = sand.u32 1, %s1123_s27   ;;  %p1488_p0 = scmp.ne.s32.totalorder %s1485_s20, 0 }
 0x120   : > { %p1489_p1 = scmp.ge.s32.totalorder %s1143_s10, 2  ;;  %s763_s13 = scalar_lea.sflag [#allocation4], %s762_s16 }
 0x122   : > { %p925_p2 = pnand %p1489_p1, %p1488_p0 }
 0x124   : > { %p926_p3 = pneg %p925_p2 }
 0x126   : > { %1114 = dma.done.wait (%p926_p3), %s763_s13, 128  }
 0x127   : > { %1116 = vsyncadd (%p926_p3), %s763_s13, 4294967168  ;;  %s772_s14 = scalar_lea.sflag [#allocation7], %s762_s16 }
 0x128   : > { %1118 = dma.done.wait (%p926_p3), %s772_s14, 128  }
 0x129   : > { %1120 = vsyncadd (%p926_p3), %s772_s14, 4294967168  ;;  %s28_s10 = sadd.s32 1, %s1143_s10   ;;  %s1490_s18 = sld [smem:[#allocation11_spill]] }
 0x12a   : > { %p25_p5 = scmp.ge.s32.totalorder %s28_s10, 4   ;;  %s1491_s27 = smov %s1127_s28 }
 0x12b   : > { %s1492_s28 = smov %s1131_s29  ;;  %s1493_s29 = smov %s1253_s19 }
 0x12c   : > { %s1494_s30 = smov %s1139_s9  ;;  %27 = sbr.rel (!%p25_p5) target bundleno = 10 (0xa), region = 113 }
 0x12f   : > { %s1495_s9 = smov %s1490_s18 }
 0x131   :  { %777 = vsyncpa [#allocation3], 1 }
 0x132   :  { %779 = vsyncpa [#allocation3 + $0x1], 1 }
 0x133   :  { %780 = vsyncpa [#allocation4], 1 }
 0x134   :  { %782 = vsyncpa [#allocation4 + $0x1], 1 }
 0x135   :  { %783 = vsyncpa [#allocation7], 1 }
 0x136   :  { %785 = vsyncpa [#allocation7 + $0x1], 1 }

</bundles_post_ra>
